<compile_context>
chip_gen: v7x
topology: tpu7x:2x2x1
jax: 0.10.0
libtpu: 0.0.40
codegen_flags: <defaults>
</compile_context>

<pallas_src>
import functools

import jax
import jax.numpy as jnp
from jax import lax
from jax.experimental import pallas as pl
from jax.experimental.pallas import tpu as pltpu

_LANES = 128
_MAX_TILE_S = 8192                    # cap on the spatial (lane) tile width
_BLOCK_F32_BYTES = 2 * 1024 * 1024    # per logit block, measured in f32 compute bytes
_VMEM_LIMIT = 48 * 1024 * 1024        # <= v7x physical 64 MiB, well under v5e/v6e 128 MiB


def _round_up(x, m):
    return ((x + m - 1) // m) * m


def _kd_kernel(s_ref, t_ref, lab_ref, hard_ref, soft_ref, *,
               temperature, valid_s, tile_s, masked):
    """Per-grid-cell partial sums (class reduction over the sublane axis):
       hard = sum over valid positions of  -log_softmax(student)[label]
       soft = sum over valid positions/classes of  p_t * (log p_t - log_softmax(student/T))
       with p_t = softmax(teacher/T).
    """
    s = s_ref[...].astype(jnp.float32)          # (BN, C, TILE_S)
    t = t_ref[...].astype(jnp.float32)          # (BN, C, TILE_S)
    lab = lab_ref[...]                          # (BN, 1, TILE_S) int32
    bn, c, _ = s.shape
    inv_t = 1.0 / float(temperature)

    if masked:
        # Ragged spatial tail: neutralize garbage BEFORE any exp/log so no Inf/NaN
        # can be produced (jnp.where selects, it does not multiply).
        col = (lax.broadcasted_iota(jnp.int32, (1, 1, tile_s), 2)
               + pl.program_id(1) * tile_s)
        lane_ok = col < valid_s                  # (1, 1, TILE_S) bool
        s = jnp.where(lane_ok, s, 0.0)
        t = jnp.where(lane_ok, t, 0.0)

    # ---- student: shared class max for both temperatures ---------------------
    m_s = jnp.max(s, axis=1, keepdims=True)      # (BN, 1, TILE_S)
    xs = s - m_s                                 # (BN, C, TILE_S), <= 0

    # hard cross-entropy (T = 1)
    z1 = jnp.sum(jnp.exp(xs), axis=1, keepdims=True)
    logp = xs - jnp.log(z1)
    cls = lax.broadcasted_iota(jnp.int32, (bn, c, tile_s), 1)
    hard_cols = -jnp.sum(jnp.where(cls == lab, logp, 0.0), axis=1)    # (BN, TILE_S)

    # student log-softmax at temperature T, reusing xs (no second max/subtract)
    xs_t = xs * inv_t
    z_q = jnp.sum(jnp.exp(xs_t), axis=1, keepdims=True)
    log_q = xs_t - jnp.log(z_q)                  # (BN, C, TILE_S)

    # ---- teacher: factored KL -------------------------------------------------
    ts = t * inv_t
    m_t = jnp.max(ts, axis=1, keepdims=True)
    ts_c = ts - m_t
    e_t = jnp.exp(ts_c)
    z_t = jnp.sum(e_t, axis=1, keepdims=True)    # (BN, 1, TILE_S)
    # sum_c p_t*(log_pt - log_q) = (sum_c e_t*(ts_c - log_q)) / z_t - log(z_t)
    numer = jnp.sum(e_t * (ts_c - log_q), axis=1)              # (BN, TILE_S)
    z_row = z_t[:, 0, :]                                       # (BN, TILE_S)
    kl_cols = numer / z_row - jnp.log(z_row)

    if masked:
        lane_mask = lane_ok[:, 0, :]                           # (1, TILE_S)
        hard_cols = jnp.where(lane_mask, hard_cols, 0.0)
        kl_cols = jnp.where(lane_mask, kl_cols, 0.0)

    # ---- lane-preserving partial sums ----------------------------------------
    # Fold lane chunks with VPU adds (keeps the 128-lane vector), then a single
    # small sublane reduce over BN.  The wrapper sums all lanes of each cell.
    hard_acc = hard_cols[:, :_LANES]
    kl_acc = kl_cols[:, :_LANES]
    for kk in range(1, tile_s // _LANES):
        lo = kk * _LANES
        hard_acc = hard_acc + hard_cols[:, lo:lo + _LANES]
        kl_acc = kl_acc + kl_cols[:, lo:lo + _LANES]
    hard_ref[...] = jnp.sum(hard_acc, axis=0, keepdims=True).reshape(1, 1, _LANES)
    soft_ref[...] = jnp.sum(kl_acc, axis=0, keepdims=True).reshape(1, 1, _LANES)


def knowledge_distillation_loss(student, teacher, labels, *, alpha, temperature):
    """Matches KnowledgeDistillationLoss.forward:
       hard  = CrossEntropyLoss()(student_NCHW, labels_NWH)            (mean over N*W*H)
       soft  = F.kl_div(log_softmax(student/T, dim=1),
                        softmax(teacher/T, dim=1))                     (mean over N*C*W*H)
       loss  = ((1-alpha)*hard + alpha*soft) / (N*W*H)
    """
    n, c, w, h = student.shape
    s_len = w * h

    # Free reshapes (no transpose, no dtype cast): spatial -> lanes, classes -> sublanes.
    s3 = student.reshape(n, c, s_len)
    t3 = teacher.reshape(n, c, s_len)
    lab3 = labels.reshape(n, 1, s_len).astype(jnp.int32)

    # ---- tile selection (budget counted in f32 compute elements) -------------
    elem_budget = _BLOCK_F32_BYTES // 4
    by_budget = max(_LANES, (elem_budget // c) // _LANES * _LANES)
    tile_s = min(_round_up(s_len, _LANES), _MAX_TILE_S, by_budget)
    g1 = -(-s_len // tile_s)                     # cdiv: ragged tail handled in-kernel
    masked = (s_len % tile_s) != 0
    # TODO(synk): very large class counts (c*128 > elem_budget) would also need
    # class-dim tiling; typical segmentation/classification c is small.

    # Fold batch rows into one block while the budget allows, but keep >=4 grid
    # steps so megacore sharding and double-buffering stay effective.
    bn = 1
    while (n % (bn * 2) == 0
           and (bn * 2) * c * tile_s <= elem_budget
           and (n // (bn * 2)) * g1 >= 4
           and bn * 2 <= 64):
        bn *= 2
    g0 = n // bn

    # TODO(synk): for small c (< 8 f32 sublanes) packing k batch rows onto the
    # sublane axis would fill vregs on compute-bound v7x; skipped here because the
    # grouped sublane reductions need relayout-prone reshapes.

    kernel = functools.partial(_kd_kernel, temperature=float(temperature),
                               valid_s=s_len, tile_s=tile_s, masked=masked)

    hard_parts, soft_parts = pl.pallas_call(
        kernel,
        out_shape=(jax.ShapeDtypeStruct((g0, g1, _LANES), jnp.float32),
                   jax.ShapeDtypeStruct((g0, g1, _LANES), jnp.float32)),
        grid_spec=pltpu.PrefetchScalarGridSpec(
            num_scalar_prefetch=0,
            grid=(g0, g1),
            in_specs=[
                pl.BlockSpec((bn, c, tile_s), lambda i, j: (i, 0, j)),
                pl.BlockSpec((bn, c, tile_s), lambda i, j: (i, 0, j)),
                pl.BlockSpec((bn, 1, tile_s), lambda i, j: (i, 0, j)),
            ],
            out_specs=[
                pl.BlockSpec((1, 1, _LANES), lambda i, j: (i, j, 0)),
                pl.BlockSpec((1, 1, _LANES), lambda i, j: (i, j, 0)),
            ],
        ),
        compiler_params=pltpu.CompilerParams(
            dimension_semantics=("parallel", "parallel"),
            vmem_limit_bytes=_VMEM_LIMIT,
        ),
    )(s3, t3, lab3)

    # Each (1,1,128) cell holds a lane-distributed partial; sum everything.
    hard_sum = jnp.sum(hard_parts)
    soft_sum = jnp.sum(soft_parts)

    rows = n * s_len
    hard_loss = hard_sum / rows            # CrossEntropyLoss 'mean' over N*W*H
    soft_loss = soft_sum / (rows * c)      # F.kl_div 'mean' over N*C*W*H
    loss = (1.0 - alpha) * hard_loss + alpha * soft_loss
    return loss / rows                     # module's extra / (n*w*h)


def _reference_loss(student, teacher, labels, *, alpha, temperature):
    """Pure-JAX reference mirroring the PyTorch module (for validation only)."""
    n, c, w, h = student.shape
    logp = jax.nn.log_softmax(student, axis=1)                       # (N,C,W,H)
    onehot = jax.nn.one_hot(labels, c, axis=1)                       # (N,C,W,H)
    hard = -jnp.sum(onehot * logp) / (n * w * h)

    s3 = student.reshape(n, c, -1)
    t3 = teacher.reshape(n, c, -1)
    log_q = jax.nn.log_softmax(s3 / temperature, axis=1)
    p_t = jax.nn.softmax(t3 / temperature, axis=1)
    soft = jnp.mean(p_t * (jnp.log(p_t) - log_q))

    return ((1.0 - alpha) * hard + alpha * soft) / (n * w * h)


if __name__ == "__main__":
    key = jax.random.PRNGKey(0)
    alpha, temperature = 0.5, 2.0

    # Case 1: lane-aligned spatial dim (256).  Case 2: ragged spatial dim (100)
    # exercising the in-kernel mask path (no wrapper padding).
    for (N, C, W, H) in [(2, 4, 16, 16), (2, 4, 10, 10)]:
        k1, k2, k3, key = jax.random.split(key, 4)
        student = jax.random.normal(k1, (N, C, W, H), dtype=jnp.float32)
        teacher = jax.random.normal(k2, (N, C, W, H), dtype=jnp.float32)
        labels = jax.random.randint(k3, (N, W, H), 0, C, dtype=jnp.int32)

        loss = jax.block_until_ready(
            knowledge_distillation_loss(student, teacher, labels,
                                        alpha=alpha, temperature=temperature))
        ref = jax.block_until_ready(
            _reference_loss(student, teacher, labels,
                            alpha=alpha, temperature=temperature))

        assert jnp.isfinite(loss), "non-finite loss"
        assert abs(float(loss) - float(ref)) < 1e-5, ((N, C, W, H), float(loss), float(ref))

    print("KERNEL_OK")
</pallas_src>

<mosaic_0001>
module attributes {stable_mosaic.version = 11 : i64} {
  func.func @_kd_kernel(%arg0: i32, %arg1: i32, %arg2: memref<1x4x256xf32, #tpu.memory_space<vmem>>, %arg3: memref<1x4x256xf32, #tpu.memory_space<vmem>>, %arg4: memref<1x1x256xi32, #tpu.memory_space<vmem>>, %arg5: memref<1x1x128xf32, #tpu.memory_space<vmem>>, %arg6: memref<1x1x128xf32, #tpu.memory_space<vmem>>) attributes {dimension_semantics = [#tpu.dimension_semantics<parallel>, #tpu.dimension_semantics<parallel>], iteration_bounds = array<i64: 2, 1>, scalar_prefetch = 0 : i64, scratch_operands = 0 : i64, tpu.core_type = #tpu.core_type<tc>, window_params = [{transform_indices = @transform_0, window_bounds = array<i64: 1, 4, 256>}, {transform_indices = @transform_1, window_bounds = array<i64: 1, 4, 256>}, {transform_indices = @transform_2, window_bounds = array<i64: 1, 1, 256>}, {transform_indices = @transform_3, window_bounds = array<i64: 1, 1, 128>}, {transform_indices = @transform_4, window_bounds = array<i64: 1, 1, 128>}]} {
    %c0 = arith.constant 0 : index
    %c0_0 = arith.constant 0 : index
    %c0_1 = arith.constant 0 : index
    %0 = vector.load %arg2[%c0, %c0_0, %c0_1] : memref<1x4x256xf32, #tpu.memory_space<vmem>>, vector<1x4x256xf32>
    %c0_2 = arith.constant 0 : index
    %c0_3 = arith.constant 0 : index
    %c0_4 = arith.constant 0 : index
    %1 = vector.load %arg3[%c0_2, %c0_3, %c0_4] : memref<1x4x256xf32, #tpu.memory_space<vmem>>, vector<1x4x256xf32>
    %c0_5 = arith.constant 0 : index
    %c0_6 = arith.constant 0 : index
    %c0_7 = arith.constant 0 : index
    %2 = vector.load %arg4[%c0_5, %c0_6, %c0_7] : memref<1x1x256xi32, #tpu.memory_space<vmem>>, vector<1x1x256xi32>
    %cst = arith.constant dense<0xFF800000> : vector<1x256xf32>
    %3 = vector.multi_reduction <maximumf>, %0, %cst [1] : vector<1x4x256xf32> to vector<1x256xf32>
    %4 = vector.shape_cast %3 : vector<1x256xf32> to vector<1x1x256xf32>
    %5 = vector.broadcast %4 : vector<1x1x256xf32> to vector<1x4x256xf32>
    %6 = arith.subf %0, %5 : vector<1x4x256xf32>
    %7 = math.exp %6 : vector<1x4x256xf32>
    %cst_8 = arith.constant dense<0.000000e+00> : vector<1x256xf32>
    %8 = vector.multi_reduction <add>, %7, %cst_8 [1] : vector<1x4x256xf32> to vector<1x256xf32>
    %9 = vector.shape_cast %8 : vector<1x256xf32> to vector<1x1x256xf32>
    %10 = math.log %9 : vector<1x1x256xf32>
    %11 = vector.broadcast %10 : vector<1x1x256xf32> to vector<1x4x256xf32>
    %12 = arith.subf %6, %11 : vector<1x4x256xf32>
    %13 = tpu.iota {dimensions = array<i32: 1>} : vector<1x4x256xi32>
    %14 = vector.broadcast %2 : vector<1x1x256xi32> to vector<1x4x256xi32>
    %15 = arith.cmpi eq, %13, %14 : vector<1x4x256xi32>
    %cst_9 = arith.constant 0.000000e+00 : f32
    %16 = vector.broadcast %cst_9 : f32 to vector<1x4x256xf32>
    %17 = arith.select %15, %12, %16 : vector<1x4x256xi1>, vector<1x4x256xf32>
    %cst_10 = arith.constant dense<0.000000e+00> : vector<1x256xf32>
    %18 = vector.multi_reduction <add>, %17, %cst_10 [1] : vector<1x4x256xf32> to vector<1x256xf32>
    %cst_11 = arith.constant 0.000000e+00 : f32
    %19 = vector.broadcast %cst_11 : f32 to vector<1x256xf32>
    %20 = arith.subf %19, %18 : vector<1x256xf32>
    %cst_12 = arith.constant 5.000000e-01 : f32
    %21 = vector.broadcast %cst_12 : f32 to vector<1x4x256xf32>
    %22 = arith.mulf %6, %21 : vector<1x4x256xf32>
    %23 = math.exp %22 : vector<1x4x256xf32>
    %cst_13 = arith.constant dense<0.000000e+00> : vector<1x256xf32>
    %24 = vector.multi_reduction <add>, %23, %cst_13 [1] : vector<1x4x256xf32> to vector<1x256xf32>
    %25 = vector.shape_cast %24 : vector<1x256xf32> to vector<1x1x256xf32>
    %26 = math.log %25 : vector<1x1x256xf32>
    %27 = vector.broadcast %26 : vector<1x1x256xf32> to vector<1x4x256xf32>
    %28 = arith.subf %22, %27 : vector<1x4x256xf32>
    %cst_14 = arith.constant 5.000000e-01 : f32
    %29 = vector.broadcast %cst_14 : f32 to vector<1x4x256xf32>
    %30 = arith.mulf %1, %29 : vector<1x4x256xf32>
    %cst_15 = arith.constant dense<0xFF800000> : vector<1x256xf32>
    %31 = vector.multi_reduction <maximumf>, %30, %cst_15 [1] : vector<1x4x256xf32> to vector<1x256xf32>
    %32 = vector.shape_cast %31 : vector<1x256xf32> to vector<1x1x256xf32>
    %33 = vector.broadcast %32 : vector<1x1x256xf32> to vector<1x4x256xf32>
    %34 = arith.subf %30, %33 : vector<1x4x256xf32>
    %35 = math.exp %34 : vector<1x4x256xf32>
    %cst_16 = arith.constant dense<0.000000e+00> : vector<1x256xf32>
    %36 = vector.multi_reduction <add>, %35, %cst_16 [1] : vector<1x4x256xf32> to vector<1x256xf32>
    %37 = vector.shape_cast %36 : vector<1x256xf32> to vector<1x1x256xf32>
    %38 = arith.subf %34, %28 : vector<1x4x256xf32>
    %39 = arith.mulf %35, %38 : vector<1x4x256xf32>
    %cst_17 = arith.constant dense<0.000000e+00> : vector<1x256xf32>
    %40 = vector.multi_reduction <add>, %39, %cst_17 [1] : vector<1x4x256xf32> to vector<1x256xf32>
    %41 = vector.shape_cast %37 : vector<1x1x256xf32> to vector<1x256xf32>
    %42 = arith.divf %40, %41 : vector<1x256xf32>
    %43 = math.log %41 : vector<1x256xf32>
    %44 = arith.subf %42, %43 : vector<1x256xf32>
    %45 = vector.extract_strided_slice %20 {offsets = [0, 0], sizes = [1, 128], strides = [1, 1]} : vector<1x256xf32> to vector<1x128xf32>
    %46 = vector.extract_strided_slice %44 {offsets = [0, 0], sizes = [1, 128], strides = [1, 1]} : vector<1x256xf32> to vector<1x128xf32>
    %47 = vector.extract_strided_slice %20 {offsets = [0, 128], sizes = [1, 128], strides = [1, 1]} : vector<1x256xf32> to vector<1x128xf32>
    %48 = arith.addf %45, %47 : vector<1x128xf32>
    %49 = vector.extract_strided_slice %44 {offsets = [0, 128], sizes = [1, 128], strides = [1, 1]} : vector<1x256xf32> to vector<1x128xf32>
    %50 = arith.addf %46, %49 : vector<1x128xf32>
    %cst_18 = arith.constant dense<0.000000e+00> : vector<128xf32>
    %51 = vector.multi_reduction <add>, %48, %cst_18 [0] : vector<1x128xf32> to vector<128xf32>
    %52 = vector.shape_cast %51 : vector<128xf32> to vector<1x128xf32>
    %53 = vector.shape_cast %52 : vector<1x128xf32> to vector<1x1x128xf32>
    %c0_19 = arith.constant 0 : index
    %c0_20 = arith.constant 0 : index
    %c0_21 = arith.constant 0 : index
    %54 = vector.load %arg5[%c0_19, %c0_20, %c0_21] : memref<1x1x128xf32, #tpu.memory_space<vmem>>, vector<1x1x128xf32>
    tpu.vector_store %arg5[%c0_19, %c0_20, %c0_21], %53 {strides = array<i32>} : memref<1x1x128xf32, #tpu.memory_space<vmem>>, vector<1x1x128xf32>,
    %cst_22 = arith.constant dense<0.000000e+00> : vector<128xf32>
    %55 = vector.multi_reduction <add>, %50, %cst_22 [0] : vector<1x128xf32> to vector<128xf32>
    %56 = vector.shape_cast %55 : vector<128xf32> to vector<1x128xf32>
    %57 = vector.shape_cast %56 : vector<1x128xf32> to vector<1x1x128xf32>
    %c0_23 = arith.constant 0 : index
    %c0_24 = arith.constant 0 : index
    %c0_25 = arith.constant 0 : index
    %58 = vector.load %arg6[%c0_23, %c0_24, %c0_25] : memref<1x1x128xf32, #tpu.memory_space<vmem>>, vector<1x1x128xf32>
    tpu.vector_store %arg6[%c0_23, %c0_24, %c0_25], %57 {strides = array<i32>} : memref<1x1x128xf32, #tpu.memory_space<vmem>>, vector<1x1x128xf32>,
    return
  }
  func.func @transform_0(%arg0: i32, %arg1: i32) -> (i32, i32, i32) {
    %c0_i32 = arith.constant 0 : i32
    %c0_i32_0 = arith.constant 0 : i32
    return %arg0, %c0_i32, %arg1 : i32, i32, i32
  }
  func.func @transform_1(%arg0: i32, %arg1: i32) -> (i32, i32, i32) {
    %c0_i32 = arith.constant 0 : i32
    %c0_i32_0 = arith.constant 0 : i32
    return %arg0, %c0_i32, %arg1 : i32, i32, i32
  }
  func.func @transform_2(%arg0: i32, %arg1: i32) -> (i32, i32, i32) {
    %c0_i32 = arith.constant 0 : i32
    %c0_i32_0 = arith.constant 0 : i32
    return %arg0, %c0_i32, %arg1 : i32, i32, i32
  }
  func.func @transform_3(%arg0: i32, %arg1: i32) -> (i32, i32, i32) {
    %c0_i32 = arith.constant 0 : i32
    %c0_i32_0 = arith.constant 0 : i32
    return %arg0, %arg1, %c0_i32 : i32, i32, i32
  }
  func.func @transform_4(%arg0: i32, %arg1: i32) -> (i32, i32, i32) {
    %c0_i32 = arith.constant 0 : i32
    %c0_i32_0 = arith.constant 0 : i32
    return %arg0, %arg1, %c0_i32 : i32, i32, i32
  }
}

</mosaic_0001>

<bundles_post_ra>
// kernel: tpu_custom_call.1
= control target key start
LH: loop header
LB: loop body
LE: loop exit
PB: predicated region body
PF: predicated region fallthrough
CT: control target
= control target key end

     0   :  { %10 = vsyncpa [#allocation3], 0  ;;  %s1317_s0 = inlined_call_operand.hbm [shape: f32[2,4,256], index: 0, kind: input, shape index: {}]   ;;  %s1318_s1 = inlined_call_operand.hbm [shape: f32[2,4,256], index: 1, kind: input, shape index: {}]   ;;  %s1319_s2 = inlined_call_operand.vmem [shape: s32[2,1,256], index: 2, kind: input, shape index: {}]   ;;  %s1320_s3 = inlined_call_operand.hbm [shape: f32[2,1,128], index: 3, kind: output, shape index: {0}]   ;;  %s1321_s4 = inlined_call_operand.hbm [shape: f32[2,1,128], index: 4, kind: output, shape index: {1}]  }
   0x1   :  { %12 = vsyncpa [#allocation3 + $0x1], 0 }
   0x2   :  { %13 = vsyncpa [#allocation6], 0 }
   0x3   :  { %15 = vsyncpa [#allocation6 + $0x1], 0 }
   0x4   :  { %16 = vsyncpa [#allocation4], 0 }
   0x5   :  { %18 = vsyncpa [#allocation4 + $0x1], 0 }
   0x6   :  { %19 = vsyncpa [#allocation9], 0 }
   0x7   :  { %21 = vsyncpa [#allocation9 + $0x1], 0  ;;  %s1017_s15 = smov 0   ;;  %s1019_s16 = smov 0  }
   0x8   :  { %s1021_s17 = smov 0   ;;  %s1023_s18 = smov 0  }
   0x9   :  { %s1025_s19 = smov 0   ;;  %s1027_s20 = smov 0  }
   0xa LB: > { %s693_s21 = sadd.s32 4294967295, %s986_s20   ;;  %s694_s22 = sadd.s32 4294967294, %s986_s20   ;;  %s986_s20 = sphi %s1027_s20, %s27_s20   ;;  %s982_s19 = sphi %s1025_s19, %s1341_s19   ;;  %s978_s18 = sphi %s1023_s18, %s1340_s18   ;;  %s974_s17 = sphi %s1021_s17, %s1339_s17   ;;  %s970_s16 = sphi %s1019_s16, %s1338_s16   ;;  %s966_s15 = sphi %s1017_s15, %s1337_s15  }
   0xb   : > { %s39_s23 = sadd.s32 1, %s982_s19  ;;  %s48_s24 = sadd.s32 1, %s974_s17 }
   0xc   : > { %p41_p0 = scmp.ge.s32.totalorder %s39_s23, 2  ;;  %p55_p1 = scmp.ne.s32.totalorder %s974_s17, %s970_s16 }
   0xd   : > { %p56_p2 = scmp.eq.s32.totalorder %s986_s20, 0  ;;  %p61_p3 = scmp.ne.s32.totalorder %s970_s16, %s966_s15 }
   0xe   : > { %s1343_s23 = smov (%p41_p0, %s39_s23), 0  ;;  %p62_p5 = scmp.eq.s32.totalorder %s693_s21, 0 }
   0xf   : > { %p1058_p4 = por %p56_p2, %p55_p1  ;;  %s43_s26 = ssub.s32 %s982_s19, %s1343_s23 }
  0x10   : > { %p143_p6 = scmp.eq.s32.totalorder %s693_s21, 1  ;;  %p46_p7 = scmp.eq.s32.totalorder %s43_s26, 0 }
  0x11   : > { %p1064_p8 = por %p62_p5, %p61_p3  ;;  %p149_p10 = scmp.eq.s32.totalorder %s694_s22, 1 }
  0x12   : > { %p1068_p9 = por %p143_p6, %p55_p1  ;;  %p735_p13 = scmp.lt.s32.totalorder %s986_s20, 2 }
  0x13   : > { %s1325_s27 = scalar_select %p1064_p8, 1, 0 }
  0x14   : > { %s1326_s28 = scalar_select %p1068_p9, 1, 0 }
  0x15   : > { %s1073_s29 = scalar_select %p46_p7, %s974_s17, %s48_s24  }
  0x16   : > { %p1075_p11 = por %p149_p10, %p61_p3  ;;  %s1082_s5 = sand.u32 1, %s974_s17  }
  0x17   : > { %s697_s6 = sshll.u32 %s1082_s5, 3  ;;  %s711_s7 = sshll.u32 %s982_s19, 7 }
  0x18   : > { %s1327_s30 = scalar_select %p1075_p11, 1, 0 }
  0x19   : > { %s1091_s10 = scalar_lea.hbm %s1317_s0, %s711_s7  ;;  %s201_s11 = scalar_lea.vmem [#allocation2], %s697_s6 }
  0x1a   : > { %s211_s12 = sshll.u32 %s201_s11, 4  ;;  %p1099_p0 = pnand %p735_p13, %p1058_p4  ;;  %s1095_s12 = int_to_ptr.vmem [resolvable:$true] %s211_s12 }
  0x1b   : > { %s198_s14 = scalar_lea.sflag [#allocation3], %s1082_s5  ;;  %s808_s21 = scalar_lea.hbm %s1091_s10, 128 }
  0x1c   : > { %p809_p3 = scmp.ne.s32.totalorder %s1091_s10, %s808_s21  ;;  %p810_p5 = pneg %p1099_p0 }
  0x1d   : > { %s813_s25 = scalar_lea.hbm %s1317_s0, 256  ;;  %p814_p4 = scmp.lt.u32.totalorder %s1091_s10, %s1317_s0 }
  0x1e   : > { %p811_p6 = pnand %p810_p5, %p809_p3  ;;  %p815_p10 = scmp.lt.u32.totalorder %s813_s25, %s808_s21 }
  0x1f   : > { %p817_p12 = scmp.lt.u32.totalorder %s808_s21, %s1091_s10 }
  0x20   : > { %p812_p7 = pneg %p811_p6  ;;  %p816_p13 = por %p815_p10, %p814_p4 }
  0x22   : > { %p818_p1 = por %p817_p12, %p816_p13 }
  0x24   : > { %p819_p2 = pnand %p818_p1, %p812_p7 }
  0x26   : > { %822 = shalt.err (!%p819_p2)
}
  0x27   : > { %s823_s9 = scalar_lea.vmem %s1095_s12, 128  ;;  %s988_s11 = smov [#allocation2]  }
  0x28   : > { %p824_p3 = scmp.ne.s32.totalorder %s1095_s12, %s823_s9  ;;  %s828_s22 = sshll.u32 %s988_s11, 4  ;;  %s829_s22 = int_to_ptr.vmem [resolvable:$false] %s828_s22 }
  0x29   : > { %s830_s24 = scalar_lea.vmem %s829_s22, 256  ;;  %p831_p9 = scmp.lt.s32.totalorder %s1095_s12, %s829_s22 }
  0x2a   : > { %p826_p6 = pnand %p824_p3, %p810_p5  ;;  %p832_p4 = scmp.lt.s32.totalorder %s830_s24, %s823_s9 }
  0x2c   : > { %p827_p11 = pneg %p826_p6  ;;  %p833_p10 = por %p832_p4, %p831_p9 }
  0x2e   : > { %p834_p12 = pnand %p833_p10, %p827_p11 }
  0x30   : > { %837 = shalt.err (!%p834_p12)
}
  0x31   : > { %724 = dma.hbm_to_vmem [thread:$0]  (!%p1099_p0), %s1091_s10, 128, %s1095_s12, %s198_s14  }
  0x32   : > { %p1329_p1 = scmp.lt.s32.totalorder %s986_s20, 3  ;;  %p1330_p2 = scmp.ge.s32.totalorder %s986_s20, 1 }
  0x33   : > { %s1144_s8 = scalar_lea.hbm %s1318_s1, %s711_s7  ;;  %s222_s9 = scalar_lea.vmem [#allocation5], %s697_s6 }
  0x34   : > { %p1135_p7 = pnand %p1330_p2, %p1329_p1  ;;  %s232_s11 = sshll.u32 %s222_s9, 4  ;;  %s233_s11 = int_to_ptr.vmem [resolvable:$true] %s232_s11 }
  0x35   : > { %s219_s10 = scalar_lea.sflag [#allocation6], %s1082_s5  ;;  %s838_s12 = scalar_lea.hbm %s1144_s8, 128 }
  0x36   : > { %s1331_s21 = scalar_select %p1135_p7, 1, 0 }
  0x37   : > { %p839_p9 = scmp.ne.s32.totalorder %s1144_s8, %s838_s12  ;;  %s843_s7 = scalar_lea.hbm %s1318_s1, 256 }
  0x38   : > { %p844_p3 = scmp.lt.u32.totalorder %s1144_s8, %s1318_s1  ;;  %p845_p6 = scmp.lt.u32.totalorder %s843_s7, %s838_s12 }
  0x39   : > { %p841_p11 = pnand %p839_p9, %p810_p5  ;;  %p847_p10 = scmp.lt.u32.totalorder %s838_s12, %s1144_s8 }
  0x3a   : > { %p846_p4 = por %p845_p6, %p844_p3 }
  0x3b   : > { %p842_p13 = pneg %p841_p11 }
  0x3c   : > { %p848_p12 = por %p847_p10, %p846_p4 }
  0x3e   : > { %p849_p1 = pnand %p848_p12, %p842_p13 }
  0x40   : > { %852 = shalt.err (!%p849_p1)
}
  0x41   : > { %s853_s5 = scalar_lea.vmem %s233_s11, 128  ;;  %s989_s6 = smov [#allocation5]  }
  0x42   : > { %p854_p2 = scmp.ne.s32.totalorder %s233_s11, %s853_s5  ;;  %s858_s26 = sshll.u32 %s989_s6, 4  ;;  %s859_s26 = int_to_ptr.vmem [resolvable:$false] %s858_s26 }
  0x43   : > { %s860_s9 = scalar_lea.vmem %s859_s26, 256  ;;  %p861_p8 = scmp.lt.s32.totalorder %s233_s11, %s859_s26 }
  0x44   : > { %p856_p9 = pnand %p854_p2, %p810_p5  ;;  %p862_p7 = scmp.lt.s32.totalorder %s860_s9, %s853_s5 }
  0x46   : > { %p857_p11 = pneg %p856_p9  ;;  %p863_p3 = por %p862_p7, %p861_p8 }
  0x48   : > { %p864_p6 = pnand %p863_p3, %p857_p11 }
  0x4a   : > { %867 = shalt.err (!%p864_p6)
}
  0x4b   : > { %727 = dma.hbm_to_vmem [thread:$0]  (!%p1099_p0), %s1144_s8, 128, %s233_s11, %s219_s10  }
  0x4c   : > { %p1332_p13 = scmp.ne.s32.totalorder %s1331_s21, 0 }
  0x4d   : > { %s1171_s12 = sand.u32 (!%p1332_p13), 1, %s970_s16   ;;  %p1333_p5 = scmp.ne.s32.totalorder (!%p1332_p13), %s1325_s27, 0 }
  0x4e   : > { %253 = sbr.rel (%p1332_p13) target bundleno = 211 (0xd3), region = 32  ;;  %s704_s14 = sshll.u32 (!%p1332_p13), %s1171_s12, 3 }
  0x4f   : > { %s256_s22 = scalar_lea.sflag (!%p1332_p13), [#allocation3], %s1171_s12  ;;  %s259_s7 = scalar_lea.vmem (!%p1332_p13), [#allocation2], %s704_s14 }
  0x55   : > { %949 = dma.done.wait (%p1333_p5), %s256_s22, 128  }
  0x56   : > { %951 = vsyncadd (%p1333_p5), %s256_s22, 4294967168  ;;  %s265_s13 = scalar_lea.sflag [#allocation6], %s1171_s12  ;;  %s268_s8 = scalar_lea.vmem [#allocation5], %s704_s14 }
  0x57   : > { %953 = dma.done.wait (%p1333_p5), %s265_s13, 128  }
  0x58   : > { %955 = vsyncadd (%p1333_p5), %s265_s13, 4294967168  ;;  %vm326_vm0 = vcmask 1043456   ;;  %v320_v0 = vld [vmem:[%s259_s7] sm:$0xff]  ;;  %v321_v1 = vld [vmem:[%s268_s8] sm:$0xff]  ;;  %p312_p8 = scmp.lt.s32.totalorder %s978_s18, 1  ;;  %s302_s25 = scalar_lea.vmem [#allocation7], %s1171_s12 }
  0x59   : > { %v324_v2 = vcombine.high %v320_v0, %v320_v0  ;;  %v327_v3 = vsel %vm326_vm0, %v320_v0, -inf  ;;  %v436_v5 = vmul.f32 0.5, %v321_v1  ;;  %s531_s5 = sshll.u32 %s302_s25, 4  ;;  %s707_s6 = sshll.u32 %s978_s18, 4  ;;  %s1224_s5 = int_to_ptr.vmem [resolvable:$true] %s531_s5 }
  0x5a   : > { %v328_v4 = vrot.slane %v327_v3, 4  ;;  %s313_s27 = scalar_select %p312_p8, %s978_s18, 1 }
  0x5b   : > { %v334_v6 = vsel %vm326_vm0, %v324_v2, -inf  ;;  %v438_v9 = vcombine.high %v436_v5, %v436_v5  ;;  %v440_v10 = vsel %vm326_vm0, %v436_v5, -inf  ;;  %s1231_s14 = scalar_lea.hbm %s1320_s3, %s707_s6  ;;  %s308_s22 = scalar_lea.vmem [#allocation8], %s1171_s12 }
  0x5c   : > { %v329_v7 = vmax.f32 %v327_v3, %v328_v4  ;;  %v335_v8 = vrot.slane %v334_v6, 4  ;;  %v441_v11 = vrot.slane %v440_v10, 4  ;;  %s706_s21 = sshll.u32 %s313_s27, 1  ;;  %s1236_s7 = sshll.u32 %s308_s22, 4  ;;  %s1261_s7 = int_to_ptr.vmem [resolvable:$true] %s1236_s7 }
  0x5d   : > { %v447_v14 = vsel %vm326_vm0, %v438_v9, -inf  ;;  %s318_s24 = scalar_lea.vmem %s1319_s2, %s706_s21  ;;  %s514_s13 = scalar_lea.sflag [#allocation4], %s1171_s12 }
  0x5e   : > { %v330_v12 = vrot.slane %v329_v7, 2  ;;  %v336_v13 = vmax.f32 %v334_v6, %v335_v8  ;;  %v442_v15 = vmax.f32 %v440_v10, %v441_v11  ;;  %v448_v16 = vrot.slane %v447_v14, 4  ;;  %s868_s8 = scalar_lea.vmem %s1224_s5, 16  ;;  %p1334_p7 = scmp.ne.s32.totalorder %s1326_s28, 0 }
  0x5f   : > { %v374_v10 = vlaneseq  ;;  %p869_p0 = scmp.ne.s32.totalorder %s1224_s5, %s868_s8  ;;  %s990_s27 = smov [#allocation7]  }
  0x60   : > { %v331_v17 = vmax.f32 %v329_v7, %v330_v12  ;;  %v337_v18 = vrot.slane %v336_v13, 2  ;;  %v443_v19 = vrot.slane %v442_v15, 2  ;;  %v449_v20 = vmax.f32 %v447_v14, %v448_v16  ;;  %s872_s21 = sshll.u32 %s990_s27, 4  ;;  %s873_s21 = int_to_ptr.vmem [resolvable:$false] %s872_s21 }
  0x61   : > { %p870_p4 = pnand %p869_p0, %p1334_p7  ;;  %s874_s11 = scalar_lea.vmem %s873_s21, 32 }
  0x62   : > { %v332_v21 = vrot.slane %v331_v17, 1  ;;  %v338_v22 = vmax.f32 %v336_v13, %v337_v18  ;;  %v444_v23 = vmax.f32 %v442_v15, %v443_v19  ;;  %v450_v24 = vrot.slane %v449_v20, 2  ;;  %p875_p12 = scmp.lt.s32.totalorder %s1224_s5, %s873_s21  ;;  %p876_p1 = scmp.lt.s32.totalorder %s874_s11, %s868_s8 }
  0x63   : > { %p871_p10 = pneg %p870_p4 }
  0x64   : > { %v333_v25 = vmax.f32 %v331_v17, %v332_v21  ;;  %v339_v26 = vrot.slane %v338_v22, 1  ;;  %v445_v27 = vrot.slane %v444_v23, 1  ;;  %v451_v28 = vmax.f32 %v449_v20, %v450_v24  ;;  %p877_p2 = por %p876_p1, %p875_p12 }
  0x65   : > { %v375_v17 = vshrl.u32 %v374_v10, 7 }
  0x66   : > { %v340_v29 = vmax.f32 %v338_v22, %v339_v26  ;;  %v446_v30 = vmax.f32 %v444_v23, %v445_v27  ;;  %v452_v31 = vrot.slane %v451_v28, 1  ;;  %v322_v22 = vld [vmem:[%s318_s24] sm:$0x3]  ;;  %p878_p9 = pnand %p877_p2, %p871_p10 }
  0x67   : > { %v378_v20 = vsub.s32 0, %v375_v17  ;;  %v382_v24 = vsub.s32 1, %v375_v17 }
  0x68   : > { %v343_v32 = vcombine.low %v333_v25, %v340_v29  ;;  %v453_v33 = vmax.f32 %v451_v28, %v452_v31 }
  0x69   : > { %v379_v28 = vrot.slane %v322_v22, %v378_v20 }
  0x6a   : > { %v1188_v34 = vsub.f32 %v320_v0, %v343_v32  ;;  %v456_v35 = vcombine.low %v446_v30, %v453_v33  ;;  %v383_v33 = vrot.slane %v322_v22, %v382_v24 }
  0x6b   : > { %vm384_vm1 = vcmp.eq.s32.totalorder %v375_v17, %v379_v28 }
  0x6c   : > { %v346_v36 = vmul.f32 1.442695, %v1188_v34  ;;  %v1192_v37 = vmul.f32 0.5, %v1188_v34  ;;  %v1194_v38 = vsub.f32 %v436_v5, %v456_v35  ;;  %vm385_vm2 = vcmp.eq.s32.totalorder %v375_v17, %v383_v33 }
  0x6e   : > { %786 = vpow2.f32 %v346_v36  ;;  %v408_v39 = vmul.f32 1.442695, %v1192_v37  ;;  %v459_v40 = vmul.f32 1.442695, %v1194_v38 }
  0x70   : > { %788 = vpow2.f32 %v408_v39 }
  0x71   : > { %790 = vpow2.f32 %v459_v40 }
  0x78   : > { %v787_v41 = vpop.eup %786 }
  0x79   : > { %v349_v42 = vcombine.high %v787_v41, %v787_v41  ;;  %v351_v43 = vsel %vm326_vm0, %v787_v41, 0.0 }
  0x7a   : > { %v789_v44 = vpop.eup %788  ;;  %v352_v45 = vrot.slane %v351_v43, 4 }
  0x7b   : > { %v1199_v46 = vpop.eup %790  ;;  %v358_v47 = vsel %vm326_vm0, %v349_v42, 0.0  ;;  %v411_v48 = vcombine.high %v789_v44, %v789_v44  ;;  %v413_v49 = vsel %vm326_vm0, %v789_v44, 0.0 }
  0x7c   : > { %v353_v50 = vadd.f32 %v352_v45, %v351_v43  ;;  %v359_v51 = vrot.slane %v358_v47, 4  ;;  %v414_v52 = vrot.slane %v413_v49, 4  ;;  %v462_v54 = vcombine.high %v1199_v46, %v1199_v46 }
  0x7d   : > { %v420_v53 = vsel %vm326_vm0, %v411_v48, 0.0  ;;  %v464_v59 = vsel %vm326_vm0, %v1199_v46, 0.0 }
  0x7e   : > { %v354_v55 = vrot.slane %v353_v50, 2  ;;  %v360_v56 = vadd.f32 %v359_v51, %v358_v47  ;;  %v415_v57 = vadd.f32 %v414_v52, %v413_v49  ;;  %v421_v58 = vrot.slane %v420_v53, 4 }
  0x7f   : > { %v471_v0 = vsel %vm326_vm0, %v462_v54, 0.0  ;;  %v465_v5 = vrot.slane %v464_v59, 4 }
  0x80   : > { %v355_v60 = vadd.f32 %v354_v55, %v353_v50  ;;  %v361_v61 = vrot.slane %v360_v56, 2  ;;  %v416_v62 = vrot.slane %v415_v57, 2  ;;  %v422_v63 = vadd.f32 %v421_v58, %v420_v53 }
  0x81   : > { %v472_v11 = vrot.slane %v471_v0, 4  ;;  %v466_v16 = vadd.f32 %v465_v5, %v464_v59 }
  0x82   : > { %v356_v1 = vrot.slane %v355_v60, 1  ;;  %v362_v2 = vadd.f32 %v361_v61, %v360_v56  ;;  %v417_v3 = vadd.f32 %v416_v62, %v415_v57  ;;  %v423_v4 = vrot.slane %v422_v63, 2 }
  0x83   : > { %v473_v18 = vadd.f32 %v472_v11, %v471_v0  ;;  %v467_v19 = vrot.slane %v466_v16, 2 }
  0x84   : > { %v357_v6 = vadd.f32 %v356_v1, %v355_v60  ;;  %v363_v7 = vrot.slane %v362_v2, 1  ;;  %v418_v8 = vrot.slane %v417_v3, 1  ;;  %v424_v9 = vadd.f32 %v423_v4, %v422_v63 }
  0x85   : > { %v474_v21 = vrot.slane %v473_v18, 2  ;;  %v468_v25 = vadd.f32 %v467_v19, %v466_v16 }
  0x86   : > { %v364_v12 = vadd.f32 %v363_v7, %v362_v2  ;;  %792 = vlog2.f32 %v357_v6  ;;  %v419_v13 = vadd.f32 %v418_v8, %v417_v3  ;;  %v425_v14 = vrot.slane %v424_v9, 1 }
  0x87   : > { %v475_v29 = vadd.f32 %v474_v21, %v473_v18  ;;  %v469_v36 = vrot.slane %v468_v25, 1 }
  0x88   : > { %794 = vlog2.f32 %v364_v12  ;;  %v426_v15 = vadd.f32 %v425_v14, %v424_v9 }
  0x89   : > { %796 = vlog2.f32 %v419_v13  ;;  %v476_v41 = vrot.slane %v475_v29, 1  ;;  %v470_v44 = vadd.f32 %v469_v36, %v468_v25 }
  0x8a   : > { %798 = vlog2.f32 %v426_v15 }
  0x8b   : > { %v477_v50 = vadd.f32 %v476_v41, %v475_v29  ;;  %800 = vrcp.f32 %v470_v44 }
  0x8c   : > { %802 = vlog2.f32 %v470_v44 }
  0x8d   : > { %804 = vlog2.f32 %v477_v50 }
  0x8e   : > { %806 = vrcp.f32 %v477_v50 }
  0x90   : > { %v793_v23 = vpop.eup %792 }
  0x91   : > { %v366_v26 = vmul.f32 0.6931472, %v793_v23 }
  0x92   : > { %v795_v27 = vpop.eup %794 }
  0x93   : > { %v797_v30 = vpop.eup %796  ;;  %v368_v31 = vmul.f32 0.6931472, %v795_v27 }
  0x94   : > { %v799_v32 = vpop.eup %798  ;;  %v428_v35 = vmul.f32 0.6931472, %v797_v30 }
  0x95   : > { %v371_v39 = vcombine.low %v366_v26, %v368_v31  ;;  %v430_v40 = vmul.f32 0.6931472, %v799_v32  ;;  %v801_v6 = vpop.eup %800 }
  0x96   : > { %v803_v9 = vpop.eup %802 }
  0x97   : > { %v373_v42 = vsub.f32 %v1188_v34, %v371_v39  ;;  %v433_v43 = vcombine.low %v428_v35, %v430_v40  ;;  %v805_v12 = vpop.eup %804  ;;  %v502_v18 = vmul.f32 0.6931472, %v803_v9 }
  0x98   : > { %v807_v19 = vpop.eup %806  ;;  %v504_v23 = vmul.f32 0.6931472, %v805_v12 }
  0x99   : > { %v387_v45 = vcombine.high %v373_v42, %v373_v42  ;;  %v389_v47 = vsel %vm384_vm1, %v373_v42, 0.0  ;;  %v435_v48 = vsub.f32 %v1192_v37, %v433_v43 }
  0x9a   : > { %v391_v49 = vsel %vm326_vm0, %v389_v47, 0.0 }
  0x9b   : > { %v390_v51 = vsel %vm385_vm2, %v387_v45, 0.0  ;;  %v392_v52 = vrot.slane %v391_v49, 4  ;;  %v478_v53 = vsub.f32 %v1194_v38, %v435_v48 }
  0x9c   : > { %v398_v54 = vsel %vm326_vm0, %v390_v51, 0.0 }
  0x9d   : > { %v393_v55 = vadd.f32 %v392_v52, %v391_v49  ;;  %v399_v56 = vrot.slane %v398_v54, 4  ;;  %v479_v34 = vmul.f32 %v1199_v46, %v478_v53 }
  0x9f   : > { %v394_v57 = vrot.slane %v393_v55, 2  ;;  %v400_v58 = vadd.f32 %v399_v56, %v398_v54  ;;  %v481_v59 = vcombine.high %v479_v34, %v479_v34  ;;  %v483_v37 = vsel %vm326_vm0, %v479_v34, 0.0 }
  0xa0   : > { %v484_v60 = vrot.slane %v483_v37, 4 }
  0xa1   : > { %v395_v61 = vadd.f32 %v394_v57, %v393_v55  ;;  %v401_v62 = vrot.slane %v400_v58, 2  ;;  %v490_v63 = vsel %vm326_vm0, %v481_v59, 0.0 }
  0xa2   : > { %v485_v38 = vadd.f32 %v484_v60, %v483_v37  ;;  %v491_v0 = vrot.slane %v490_v63, 4 }
  0xa3   : > { %v396_v1 = vrot.slane %v395_v61, 1  ;;  %v402_v2 = vadd.f32 %v401_v62, %v400_v58 }
  0xa4   : > { %v486_v46 = vrot.slane %v485_v38, 2  ;;  %v492_v3 = vadd.f32 %v491_v0, %v490_v63 }
  0xa5   : > { %v397_v4 = vadd.f32 %v396_v1, %v395_v61  ;;  %v403_v5 = vrot.slane %v402_v2, 1 }
  0xa6   : > { %v487_v7 = vadd.f32 %v486_v46, %v485_v38  ;;  %v493_v8 = vrot.slane %v492_v3, 2 }
  0xa7   : > { %v404_v10 = vadd.f32 %v403_v5, %v402_v2  ;;  %v405_v11 = vsub.f32 0.0, %v397_v4 }
  0xa8   : > { %v488_v13 = vrot.slane %v487_v7, 1  ;;  %v494_v14 = vadd.f32 %v493_v8, %v492_v3 }
  0xa9   : > { %v406_v15 = vsub.f32 0.0, %v404_v10 }
  0xaa   : > { %v489_v16 = vadd.f32 %v488_v13, %v487_v7  ;;  %v495_v17 = vrot.slane %v494_v14, 1 }
  0xab   : > { %v507_v20 = vadd.f32 %v406_v15, %v405_v11 }
  0xac   : > { %v496_v21 = vadd.f32 %v495_v17, %v494_v14  ;;  %v498_v22 = vmul.f32 %v801_v6, %v489_v16 }
  0xad   : > { %510 = vst [vmem:[%s302_s25] sm:$0x1] %v507_v20 }
  0xae   : > { %v500_v24 = vmul.f32 %v807_v19, %v496_v21  ;;  %v505_v25 = vsub.f32 %v498_v22, %v502_v18 }
  0xaf   : > { %881 = shalt.err (!%p878_p9)
}
  0xb0   : > { %s882_s10 = scalar_lea.hbm %s1231_s14, 16  ;;  %s886_s26 = scalar_lea.hbm %s1320_s3, 32 }
  0xb1   : > { %p883_p11 = scmp.ne.s32.totalorder %s1231_s14, %s882_s10  ;;  %p887_p13 = scmp.lt.u32.totalorder %s1231_s14, %s1320_s3 }
  0xb2   : > { %p888_p5 = scmp.lt.u32.totalorder %s886_s26, %s882_s10  ;;  %p890_p0 = scmp.lt.u32.totalorder %s882_s10, %s1231_s14 }
  0xb3   : > { %p884_p3 = pnand %p883_p11, %p1334_p7 }
  0xb4   : > { %p889_p8 = por %p888_p5, %p887_p13 }
  0xb5   : > { %p885_p6 = pneg %p884_p3 }
  0xb6   : > { %p891_p4 = por %p890_p0, %p889_p8 }
  0xb8   : > { %p892_p10 = pnand %p891_p4, %p885_p6 }
  0xba   : > { %895 = shalt.err (!%p892_p10)
}
  0xbb   : > { %717 = dma.vmem_to_hbm [thread:$0]  (%p1334_p7), %s1224_s5, 16, %s1231_s14, %s514_s13   ;;  %v506_v26 = vsub.f32 %v500_v24, %v504_v23 }
  0xbc   : > { %s1268_s11 = scalar_lea.hbm %s1321_s4, %s707_s6  ;;  %s518_s10 = scalar_lea.sflag [#allocation9], %s1171_s12 }
  0xbd   : > { %v508_v27 = vadd.f32 %v506_v26, %v505_v25  ;;  %s896_s24 = scalar_lea.vmem %s1261_s7, 16  ;;  %s991_s5 = smov [#allocation8]  }
  0xbe   : > { %p897_p12 = scmp.ne.s32.totalorder %s1261_s7, %s896_s24  ;;  %s900_s14 = sshll.u32 %s991_s5, 4  ;;  %s901_s14 = int_to_ptr.vmem [resolvable:$false] %s900_s14 }
  0xbf   : > { %512 = vst [vmem:[%s308_s22] sm:$0x1] %v508_v27  ;;  %s902_s13 = scalar_lea.vmem %s901_s14, 32  ;;  %p903_p9 = scmp.lt.s32.totalorder %s1261_s7, %s901_s14 }
  0xc0   : > { %p898_p1 = pnand %p897_p12, %p1334_p7  ;;  %p904_p11 = scmp.lt.s32.totalorder %s902_s13, %s896_s24 }
  0xc2   : > { %p899_p2 = pneg %p898_p1  ;;  %p905_p3 = por %p904_p11, %p903_p9 }
  0xc4   : > { %p906_p6 = pnand %p905_p3, %p899_p2 }
  0xc6   : > { %909 = shalt.err (!%p906_p6)
}
  0xc7   : > { %s910_s18 = scalar_lea.hbm %s1268_s11, 16  ;;  %s914_s22 = scalar_lea.hbm %s1321_s4, 32 }
  0xc8   : > { %p911_p13 = scmp.ne.s32.totalorder %s1268_s11, %s910_s18  ;;  %p915_p0 = scmp.lt.u32.totalorder %s1268_s11, %s1321_s4 }
  0xc9   : > { %p916_p4 = scmp.lt.u32.totalorder %s914_s22, %s910_s18  ;;  %p918_p12 = scmp.lt.u32.totalorder %s910_s18, %s1268_s11 }
  0xca   : > { %p912_p5 = pnand %p911_p13, %p1334_p7 }
  0xcb   : > { %p917_p10 = por %p916_p4, %p915_p0 }
  0xcc   : > { %p913_p8 = pneg %p912_p5 }
  0xcd   : > { %p919_p1 = por %p918_p12, %p917_p10 }
  0xcf   : > { %p920_p2 = pnand %p919_p1, %p913_p8 }
  0xd1   : > { %923 = shalt.err (!%p920_p2)
}
  0xd2   : > { %718 = dma.vmem_to_hbm [thread:$0]  (%p1334_p7), %s1261_s7, 16, %s1268_s11, %s518_s10  }
  0xd3 PF: > { %s557_s9 = sand.u32 1, %s966_s15   ;;  %p1335_p9 = scmp.ne.s32.totalorder %s1327_s30, 0 }
  0xd4   : > { %p1336_p11 = scmp.ge.s32.totalorder %s986_s20, 2  ;;  %s558_s27 = scalar_lea.sflag [#allocation4], %s557_s9 }
  0xd6   : > { %p729_p3 = pnand %p1336_p11, %p1335_p9 }
  0xd8   : > { %957 = dma.done.wait (!%p729_p3), %s558_s27, 16  }
  0xd9   : > { %959 = vsyncadd (!%p729_p3), %s558_s27, 4294967280  ;;  %s566_s8 = scalar_lea.sflag [#allocation9], %s557_s9 }
  0xda   : > { %961 = dma.done.wait (!%p729_p3), %s566_s8, 16  }
  0xdb   : > { %963 = vsyncadd (!%p729_p3), %s566_s8, 4294967280  ;;  %s27_s20 = sadd.s32 1, %s986_s20   ;;  %s1337_s15 = smov %s970_s16 }
  0xdc   : > { %p24_p6 = scmp.ge.s32.totalorder %s27_s20, 4   ;;  %s1338_s16 = smov %s974_s17 }
  0xdd   : > { %s1339_s17 = smov %s1073_s29  ;;  %s1340_s18 = smov %s982_s19 }
  0xde   : > { %s1341_s19 = smov %s1343_s23  ;;  %26 = sbr.rel (!%p24_p6) target bundleno = 10 (0xa), region = 110 }
  0xe5   :  { %570 = vsyncpa [#allocation3], 1 }
  0xe6   :  { %572 = vsyncpa [#allocation3 + $0x1], 1 }
  0xe7   :  { %573 = vsyncpa [#allocation6], 1 }
  0xe8   :  { %575 = vsyncpa [#allocation6 + $0x1], 1 }
  0xe9   :  { %576 = vsyncpa [#allocation4], 1 }
  0xea   :  { %578 = vsyncpa [#allocation4 + $0x1], 1 }
  0xeb   :  { %579 = vsyncpa [#allocation9], 1 }
  0xec   :  { %581 = vsyncpa [#allocation9 + $0x1], 1 }

</bundles_post_ra>
